<compile_context>
chip_gen: v6e
topology: v6e:2x2x1
jax: 0.10.0
libtpu: 0.0.40
codegen_flags: <defaults>
</compile_context>

<pallas_src>
from functools import partial

import jax
import jax.numpy as jnp
from jax.experimental import pallas as pl
from jax.experimental.pallas import tpu as pltpu

TILE_B = 2048  # default batch tile (multiple of 8; >=256 keeps MXU result slabs wide)


def sae_kernel(x_ref, w1_ref, b1_ref, w2_ref, b2_ref,
               w3_ref, b3_ref, w4_ref, b4_ref, o_ref, *, act_dtype):
    """One batch tile. Natural-layout I/O, lane-dense (feature-major) compute."""
    mm = w1_ref.dtype                                   # bf16 matmul operands

    # [tile_b, input_dim] (natural) -> [input_dim, tile_b] on the XLU, then bf16.
    xT = x_ref[...].T.astype(mm)

    # Encoder
    h = jnp.dot(w1_ref[...], xT, preferred_element_type=jnp.float32) + b1_ref[...]
    h = jax.nn.sigmoid(h.astype(act_dtype))                              # [20, tile_b]
    z = jnp.dot(w2_ref[...], h.astype(mm), preferred_element_type=jnp.float32) + b2_ref[...]
    z = jnp.tanh(z.astype(act_dtype))                                    # [hidden, tile_b]

    # Decoder
    d = jnp.dot(w3_ref[...], z.astype(mm), preferred_element_type=jnp.float32) + b3_ref[...]
    d = jax.nn.sigmoid(d.astype(act_dtype))                              # [20, tile_b]
    yT = jnp.dot(w4_ref[...], d.astype(mm), preferred_element_type=jnp.float32) + b4_ref[...]

    # Back to natural [tile_b, input_dim] layout for the store.
    o_ref[...] = yT.T.astype(o_ref.dtype)


def sae_forward(x, params, *, tile_b=TILE_B, matmul_dtype=jnp.bfloat16,
                act_dtype=jnp.float32, out_dtype=None):
    """x: [B, input_dim] float32. params: weights [out, in] (PyTorch layout), biases [out, 1]."""
    B, input_dim = x.shape
    hidden_dim = params["w2"].shape[0]
    out_dtype = x.dtype if out_dtype is None else out_dtype

    if tile_b % 8 != 0:
        raise ValueError("tile_b must be a multiple of 8")

    # Clamp the tile to the batch (no full-tile padding floor for small B);
    # tb == B is a full-dim block, tb < B is a multiple of 8 -> both legal.
    tb = min(tile_b, B)
    # v7x megacore: if there is real work but the grid collapsed to one step,
    # split the batch in two so ("parallel",) can shard it across both cores.
    if B > 512 and pl.cdiv(B, tb) < 2:
        tb = max(8, ((pl.cdiv(B, 2) + 7) // 8) * 8)
    grid = (pl.cdiv(B, tb),)

    # Weights fed to the MXU in bf16; biases stay f32 (added post-accumulation).
    # (Cast is hoisted/fused when the wrapper is jitted -- see __main__.)
    w = {k: params[k].astype(matmul_dtype) for k in ("w1", "w2", "w3", "w4")}
    b = {k: params[k] for k in ("b1", "b2", "b3", "b4")}

    def full_block(arr):
        # Whole-array block, constant index -> fetched once, VMEM-resident across the grid.
        return pl.BlockSpec(arr.shape, lambda i: (0, 0))

    param_bytes = sum(int(v.size) * v.dtype.itemsize for v in list(w.values()) + list(b.values()))
    io_itemsize = x.dtype.itemsize + jnp.dtype(out_dtype).itemsize
    # Double-buffered x/out tiles + params + headroom for kernel intermediates.
    vmem_limit = int(min(96 * 1024 * 1024,
                         max(16 * 1024 * 1024,
                             2 * 2 * tb * input_dim * 4 + param_bytes + 8 * 1024 * 1024)))

    rows = grid[0] * tb  # rows actually computed (incl. ragged tail)
    flops = 2 * rows * (input_dim * 20 + 20 * hidden_dim + hidden_dim * 20 + 20 * input_dim)
    transcendentals = rows * (20 + hidden_dim + 20)
    bytes_accessed = B * input_dim * io_itemsize + param_bytes

    y = pl.pallas_call(
        partial(sae_kernel, act_dtype=act_dtype),
        out_shape=jax.ShapeDtypeStruct((B, input_dim), out_dtype),
        grid=grid,
        in_specs=[
            pl.BlockSpec((tb, input_dim), lambda i: (i, 0)),   # x streams per batch tile
            full_block(w["w1"]), full_block(b["b1"]),
            full_block(w["w2"]), full_block(b["b2"]),
            full_block(w["w3"]), full_block(b["b3"]),
            full_block(w["w4"]), full_block(b["b4"]),
        ],
        out_specs=pl.BlockSpec((tb, input_dim), lambda i: (i, 0)),
        compiler_params=pltpu.CompilerParams(
            dimension_semantics=("parallel",),                 # v7x: shard batch across 2 TCs
            vmem_limit_bytes=vmem_limit),
        cost_estimate=pl.CostEstimate(
            flops=flops, transcendentals=transcendentals, bytes_accessed=bytes_accessed),
    )(x,
      w["w1"], b["b1"], w["w2"], b["b2"],
      w["w3"], b["b3"], w["w4"], b["b4"])

    return y


def init_sae_params(key, input_dim, hidden_dim):
    """Deterministic synthetic parameters. Weights [out, in] (PyTorch layout); biases [out, 1]."""
    ks = jax.random.split(key, 8)

    def lin(kw, kb, fan_in, fan_out):
        # PyTorch Linear default: U(-1/sqrt(fan_in), 1/sqrt(fan_in))
        bound = float(fan_in) ** -0.5
        w = jax.random.uniform(kw, (fan_out, fan_in), jnp.float32, -bound, bound)
        b = jax.random.uniform(kb, (fan_out, 1), jnp.float32, -bound, bound)
        return w, b

    w1, b1 = lin(ks[0], ks[1], input_dim, 20)          # encoder.linear1
    w2, b2 = lin(ks[2], ks[3], 20, hidden_dim)         # encoder.linear2
    w3, b3 = lin(ks[4], ks[5], hidden_dim, 20)         # decoder.linear1
    w4, b4 = lin(ks[6], ks[7], 20, input_dim)          # decoder.linear2
    return {"w1": w1, "b1": b1, "w2": w2, "b2": b2,
            "w3": w3, "b3": b3, "w4": w4, "b4": b4}


def sae_reference(x, p):
    """Pure-JAX f32 reference for correctness check."""
    h = jax.nn.sigmoid(x @ p["w1"].T + p["b1"].T)
    z = jnp.tanh(h @ p["w2"].T + p["b2"].T)
    d = jax.nn.sigmoid(z @ p["w3"].T + p["b3"].T)
    return d @ p["w4"].T + p["b4"].T


if __name__ == "__main__":
    input_dim = 32
    hidden_dim = 16
    batch = 8

    key = jax.random.PRNGKey(0)
    k_x, k_x2, k_p = jax.random.split(key, 3)
    x = jax.random.normal(k_x, (batch, input_dim), jnp.float32)
    params = init_sae_params(k_p, input_dim, hidden_dim)

    # Jit the wrapper so the bf16 weight cast is hoisted/fused with the kernel.
    fwd = jax.jit(sae_forward)
    out = jax.block_until_ready(fwd(x, params))
    ref = sae_reference(x, params)
    assert out.shape == (batch, input_dim)
    # bf16 matmul operands (f32 accumulation) -> loose tolerance vs the f32 reference.
    assert jnp.allclose(out, ref, atol=2e-2, rtol=2e-2), "mismatch vs reference (small batch)"

    # Exercise a multi-step grid with a ragged last tile (300 rows, 128-row tiles).
    x2 = jax.random.normal(k_x2, (300, input_dim), jnp.float32)
    fwd2 = jax.jit(lambda a, p: sae_forward(a, p, tile_b=128))
    out2 = jax.block_until_ready(fwd2(x2, params))
    ref2 = sae_reference(x2, params)
    assert out2.shape == (300, input_dim)
    assert jnp.allclose(out2, ref2, atol=2e-2, rtol=2e-2), "mismatch vs reference (tiled batch)"

    print("KERNEL_OK")
</pallas_src>

<mosaic_0001>
module attributes {stable_mosaic.version = 11 : i64} {
  func.func @sae_kernel(%arg0: i32, %arg1: memref<8x32xf32, #tpu.memory_space<vmem>>, %arg2: memref<20x32xbf16, #tpu.memory_space<vmem>>, %arg3: memref<20x1xf32, #tpu.memory_space<vmem>>, %arg4: memref<16x20xbf16, #tpu.memory_space<vmem>>, %arg5: memref<16x1xf32, #tpu.memory_space<vmem>>, %arg6: memref<20x16xbf16, #tpu.memory_space<vmem>>, %arg7: memref<20x1xf32, #tpu.memory_space<vmem>>, %arg8: memref<32x20xbf16, #tpu.memory_space<vmem>>, %arg9: memref<32x1xf32, #tpu.memory_space<vmem>>, %arg10: memref<8x32xf32, #tpu.memory_space<vmem>>) attributes {dimension_semantics = [#tpu.dimension_semantics<parallel>], iteration_bounds = array<i64: 1>, scalar_prefetch = 0 : i64, scratch_operands = 0 : i64, tpu.core_type = #tpu.core_type<tc>, window_params = [{transform_indices = @transform_0, window_bounds = array<i64: 8, 32>}, {pipeline_mode = #tpu.pipeline_mode<synchronous>, transform_indices = @transform_1, window_bounds = array<i64: 20, 32>}, {pipeline_mode = #tpu.pipeline_mode<synchronous>, transform_indices = @transform_2, window_bounds = array<i64: 20, 1>}, {pipeline_mode = #tpu.pipeline_mode<synchronous>, transform_indices = @transform_3, window_bounds = array<i64: 16, 20>}, {pipeline_mode = #tpu.pipeline_mode<synchronous>, transform_indices = @transform_4, window_bounds = array<i64: 16, 1>}, {pipeline_mode = #tpu.pipeline_mode<synchronous>, transform_indices = @transform_5, window_bounds = array<i64: 20, 16>}, {pipeline_mode = #tpu.pipeline_mode<synchronous>, transform_indices = @transform_6, window_bounds = array<i64: 20, 1>}, {pipeline_mode = #tpu.pipeline_mode<synchronous>, transform_indices = @transform_7, window_bounds = array<i64: 32, 20>}, {pipeline_mode = #tpu.pipeline_mode<synchronous>, transform_indices = @transform_8, window_bounds = array<i64: 32, 1>}, {transform_indices = @transform_9, window_bounds = array<i64: 8, 32>}]} {
    %c0 = arith.constant 0 : index
    %c0_0 = arith.constant 0 : index
    %0 = vector.load %arg1[%c0, %c0_0] : memref<8x32xf32, #tpu.memory_space<vmem>>, vector<8x32xf32>
    %1 = tpu.transpose %0, [1, 0] : vector<8x32xf32> -> vector<32x8xf32>
    %2 = arith.truncf %1 : vector<32x8xf32> to vector<32x8xbf16>
    %c0_1 = arith.constant 0 : index
    %c0_2 = arith.constant 0 : index
    %3 = vector.load %arg2[%c0_1, %c0_2] : memref<20x32xbf16, #tpu.memory_space<vmem>>, vector<20x32xbf16>
    %cst = arith.constant dense<0.000000e+00> : vector<20x8xf32>
    %4 = tpu.matmul %3, %2, %cst {dimension_numbers = #tpu.dot_dimension_numbers<[1], [0], [0], [1], [0, 0, 1, 1], [], []>} : vector<20x32xbf16>, vector<32x8xbf16>, vector<20x8xf32> -> vector<20x8xf32>
    %c0_3 = arith.constant 0 : index
    %c0_4 = arith.constant 0 : index
    %5 = vector.load %arg3[%c0_3, %c0_4] : memref<20x1xf32, #tpu.memory_space<vmem>>, vector<20x1xf32>
    %6 = vector.broadcast %5 : vector<20x1xf32> to vector<20x8xf32>
    %7 = arith.addf %4, %6 : vector<20x8xf32>
    %8 = arith.negf %7 : vector<20x8xf32>
    %9 = math.exp %8 : vector<20x8xf32>
    %cst_5 = arith.constant 1.000000e+00 : f32
    %10 = vector.broadcast %cst_5 : f32 to vector<20x8xf32>
    %11 = arith.addf %10, %9 : vector<20x8xf32>
    %12 = arith.divf %10, %11 : vector<20x8xf32>
    %c0_6 = arith.constant 0 : index
    %c0_7 = arith.constant 0 : index
    %13 = vector.load %arg4[%c0_6, %c0_7] : memref<16x20xbf16, #tpu.memory_space<vmem>>, vector<16x20xbf16>
    %14 = arith.truncf %12 : vector<20x8xf32> to vector<20x8xbf16>
    %cst_8 = arith.constant dense<0.000000e+00> : vector<16x8xf32>
    %15 = tpu.matmul %13, %14, %cst_8 {dimension_numbers = #tpu.dot_dimension_numbers<[1], [0], [0], [1], [0, 0, 1, 1], [], []>} : vector<16x20xbf16>, vector<20x8xbf16>, vector<16x8xf32> -> vector<16x8xf32>
    %c0_9 = arith.constant 0 : index
    %c0_10 = arith.constant 0 : index
    %16 = vector.load %arg5[%c0_9, %c0_10] : memref<16x1xf32, #tpu.memory_space<vmem>>, vector<16x1xf32>
    %17 = vector.broadcast %16 : vector<16x1xf32> to vector<16x8xf32>
    %18 = arith.addf %15, %17 : vector<16x8xf32>
    %19 = math.tanh %18 : vector<16x8xf32>
    %c0_11 = arith.constant 0 : index
    %c0_12 = arith.constant 0 : index
    %20 = vector.load %arg6[%c0_11, %c0_12] : memref<20x16xbf16, #tpu.memory_space<vmem>>, vector<20x16xbf16>
    %21 = arith.truncf %19 : vector<16x8xf32> to vector<16x8xbf16>
    %cst_13 = arith.constant dense<0.000000e+00> : vector<20x8xf32>
    %22 = tpu.matmul %20, %21, %cst_13 {dimension_numbers = #tpu.dot_dimension_numbers<[1], [0], [0], [1], [0, 0, 1, 1], [], []>} : vector<20x16xbf16>, vector<16x8xbf16>, vector<20x8xf32> -> vector<20x8xf32>
    %c0_14 = arith.constant 0 : index
    %c0_15 = arith.constant 0 : index
    %23 = vector.load %arg7[%c0_14, %c0_15] : memref<20x1xf32, #tpu.memory_space<vmem>>, vector<20x1xf32>
    %24 = vector.broadcast %23 : vector<20x1xf32> to vector<20x8xf32>
    %25 = arith.addf %22, %24 : vector<20x8xf32>
    %26 = arith.negf %25 : vector<20x8xf32>
    %27 = math.exp %26 : vector<20x8xf32>
    %cst_16 = arith.constant 1.000000e+00 : f32
    %28 = vector.broadcast %cst_16 : f32 to vector<20x8xf32>
    %29 = arith.addf %28, %27 : vector<20x8xf32>
    %30 = arith.divf %28, %29 : vector<20x8xf32>
    %c0_17 = arith.constant 0 : index
    %c0_18 = arith.constant 0 : index
    %31 = vector.load %arg8[%c0_17, %c0_18] : memref<32x20xbf16, #tpu.memory_space<vmem>>, vector<32x20xbf16>
    %32 = arith.truncf %30 : vector<20x8xf32> to vector<20x8xbf16>
    %cst_19 = arith.constant dense<0.000000e+00> : vector<32x8xf32>
    %33 = tpu.matmul %31, %32, %cst_19 {dimension_numbers = #tpu.dot_dimension_numbers<[1], [0], [0], [1], [0, 0, 1, 1], [], []>} : vector<32x20xbf16>, vector<20x8xbf16>, vector<32x8xf32> -> vector<32x8xf32>
    %c0_20 = arith.constant 0 : index
    %c0_21 = arith.constant 0 : index
    %34 = vector.load %arg9[%c0_20, %c0_21] : memref<32x1xf32, #tpu.memory_space<vmem>>, vector<32x1xf32>
    %35 = vector.broadcast %34 : vector<32x1xf32> to vector<32x8xf32>
    %36 = arith.addf %33, %35 : vector<32x8xf32>
    %37 = tpu.transpose %36, [1, 0] : vector<32x8xf32> -> vector<8x32xf32>
    %c0_22 = arith.constant 0 : index
    %c0_23 = arith.constant 0 : index
    %38 = vector.load %arg10[%c0_22, %c0_23] : memref<8x32xf32, #tpu.memory_space<vmem>>, vector<8x32xf32>
    tpu.vector_store %arg10[%c0_22, %c0_23], %37 {strides = array<i32>} : memref<8x32xf32, #tpu.memory_space<vmem>>, vector<8x32xf32>,
    return
  }
  func.func @transform_0(%arg0: i32) -> (i32, i32) {
    %c0_i32 = arith.constant 0 : i32
    %c0_i32_0 = arith.constant 0 : i32
    return %arg0, %c0_i32 : i32, i32
  }
  func.func @transform_1(%arg0: i32) -> (i32, i32) {
    %c0_i32 = arith.constant 0 : i32
    %c0_i32_0 = arith.constant 0 : i32
    %c0_i32_1 = arith.constant 0 : i32
    return %c0_i32, %c0_i32_0 : i32, i32
  }
  func.func @transform_2(%arg0: i32) -> (i32, i32) {
    %c0_i32 = arith.constant 0 : i32
    %c0_i32_0 = arith.constant 0 : i32
    %c0_i32_1 = arith.constant 0 : i32
    return %c0_i32, %c0_i32_0 : i32, i32
  }
  func.func @transform_3(%arg0: i32) -> (i32, i32) {
    %c0_i32 = arith.constant 0 : i32
    %c0_i32_0 = arith.constant 0 : i32
    %c0_i32_1 = arith.constant 0 : i32
    return %c0_i32, %c0_i32_0 : i32, i32
  }
  func.func @transform_4(%arg0: i32) -> (i32, i32) {
    %c0_i32 = arith.constant 0 : i32
    %c0_i32_0 = arith.constant 0 : i32
    %c0_i32_1 = arith.constant 0 : i32
    return %c0_i32, %c0_i32_0 : i32, i32
  }
  func.func @transform_5(%arg0: i32) -> (i32, i32) {
    %c0_i32 = arith.constant 0 : i32
    %c0_i32_0 = arith.constant 0 : i32
    %c0_i32_1 = arith.constant 0 : i32
    return %c0_i32, %c0_i32_0 : i32, i32
  }
  func.func @transform_6(%arg0: i32) -> (i32, i32) {
    %c0_i32 = arith.constant 0 : i32
    %c0_i32_0 = arith.constant 0 : i32
    %c0_i32_1 = arith.constant 0 : i32
    return %c0_i32, %c0_i32_0 : i32, i32
  }
  func.func @transform_7(%arg0: i32) -> (i32, i32) {
    %c0_i32 = arith.constant 0 : i32
    %c0_i32_0 = arith.constant 0 : i32
    %c0_i32_1 = arith.constant 0 : i32
    return %c0_i32, %c0_i32_0 : i32, i32
  }
  func.func @transform_8(%arg0: i32) -> (i32, i32) {
    %c0_i32 = arith.constant 0 : i32
    %c0_i32_0 = arith.constant 0 : i32
    %c0_i32_1 = arith.constant 0 : i32
    return %c0_i32, %c0_i32_0 : i32, i32
  }
  func.func @transform_9(%arg0: i32) -> (i32, i32) {
    %c0_i32 = arith.constant 0 : i32
    %c0_i32_0 = arith.constant 0 : i32
    return %arg0, %c0_i32 : i32, i32
  }
}

</mosaic_0001>

<bundles_post_ra>
// kernel: sae_forward.1
= control target key start
LH: loop header
LB: loop body
LE: loop exit
PB: predicated region body
PF: predicated region fallthrough
CT: control target
= control target key end

     0   :  { %s747_s0 = inlined_call_operand.vmem [shape: f32[8,32], index: 0, kind: input, shape index: {}]   ;;  %s748_s1 = inlined_call_operand.vmem [shape: bf16[20,32], index: 1, kind: input, shape index: {}]   ;;  %s749_s2 = inlined_call_operand.vmem [shape: f32[20,1], index: 2, kind: input, shape index: {}]   ;;  %s750_s3 = inlined_call_operand.vmem [shape: bf16[16,20], index: 3, kind: input, shape index: {}]   ;;  %s751_s4 = inlined_call_operand.vmem [shape: f32[16,1], index: 4, kind: input, shape index: {}]   ;;  %s752_s5 = inlined_call_operand.vmem [shape: bf16[20,16], index: 5, kind: input, shape index: {}]   ;;  %s753_s6 = inlined_call_operand.vmem [shape: f32[20,1], index: 6, kind: input, shape index: {}]   ;;  %s754_s7 = inlined_call_operand.vmem [shape: bf16[32,20], index: 7, kind: input, shape index: {}]   ;;  %s755_s8 = inlined_call_operand.vmem [shape: f32[32,1], index: 8, kind: input, shape index: {}]   ;;  %s756_s9 = inlined_call_operand.hbm [shape: f32[8,32], index: 9, kind: output, shape index: {}]  }
   0x1   :  { %v34_v0 = vld [vmem:[%s747_s0] sm:$0xff] }
   0x2   :  { %35 = vxpose.xlu0.b32.start.end [1/1] (short) (narrow) %v34_v0, 32 }
   0x3   :  { %14 = vsyncpa [#allocation3], 0  ;;  %v562_v1 = vld [vmem:[%s748_s1] sm:$0xff]   ;;  %vm98_vm0 = vcmask 261120   ;;  %v619_v3 = vmov 0   ;;  %v73_v4 = vld [vmem:[%s749_s2 + $0x8] sm:$0xff] }
   0x4   :  { %529 = vmatprep.mubr.msk.bf16.mxu0 %vm98_vm0, %v562_v1  ;;  %v72_v2 = vld [vmem:[%s749_s2] sm:$0xff]  ;;  %561 = vset.pattern.permute.xlu1 %v619_v3  ;;  %v176_v6 = vld [vmem:[%s751_s4 + $0x8] sm:$0xff]  ;;  %v249_v7 = vld [vmem:[%s753_s6 + $0x10] sm:$0xf]  ;;  %v620_v22 = vmov 0.0   ;;  %vm621_vm1 = vmmov 0  }
   0x5   :  { %77 = vperm.xlu1 %561, %v72_v2   ;;  %v175_v5 = vld [vmem:[%s751_s4] sm:$0xff]  ;;  %v248_v9 = vld [vmem:[%s753_s6 + $0x8] sm:$0xff]  ;;  %v74_v12 = vld [vmem:[%s749_s2 + $0x10] sm:$0xf]  ;;  %533 = vmatprep.subr.bf16.mxu1 %v620_v22  ;;  %vm196_vm2 = vcmask 1041408   ;;  %vm192_vm3 = vcmask 162816  }
   0x6   :  { %v247_v8 = vld [vmem:[%s753_s6] sm:$0xff]  ;;  %v353_v11 = vld [vmem:[%s755_s8 + $0x8] sm:$0xff]  ;;  %v354_v13 = vld [vmem:[%s755_s8 + $0x10] sm:$0xff]  ;;  %537 = vmatprep.mubr.msk.bf16.mxu1 %vm621_vm1, %v620_v22  ;;  %vm273_vm4 = vcmask 130048  }
   0x7   :  { %v352_v10 = vld [vmem:[%s755_s8] sm:$0xff]  ;;  %v355_v14 = vld [vmem:[%s755_s8 + $0x18] sm:$0xff]  ;;  %v563_v21 = vld [vmem:[%s748_s1 + $0x8] ss:$0 sps:$4 sm:$0x33]  }
   0x8   :  { %v564_v48 = vld [vmem:[%s750_s3] sm:$0xff]   ;;  %v566_v61 = vld [vmem:[%s752_s5 + $0x8] ss:$0 sps:$4 sm:$0x33]  }
   0x9   :  { %82 = vperm.xlu1 %561, %v73_v4   ;;  %v565_v49 = vld [vmem:[%s752_s5] sm:$0xff]  }
   0xa   :  { %v567_v62 = vld [vmem:[%s754_s7] sm:$0xff]  }
   0xd   :  { %179 = vperm.xlu1 %561, %v175_v5  }
  0x11   :  { %184 = vperm.xlu1 %561, %v176_v6  }
  0x15   :  { %262 = vperm.xlu1 %561, %v249_v7  }
  0x19   :  { %252 = vperm.xlu1 %561, %v247_v8  }
  0x1d   :  { %257 = vperm.xlu1 %561, %v248_v9  }
  0x21   :  { %358 = vperm.xlu1 %561, %v352_v10  }
  0x25   :  { %363 = vperm.xlu1 %561, %v353_v11  }
  0x29   :  { %368 = vperm.xlu1 %561, %v354_v13  }
  0x2b   :  { %560 = vset.pattern.permute.xlu0 %v619_v3 }
  0x2d   :  { %373 = vperm.xlu1 %561, %v355_v14  }
  0x37   :  { %87 = vperm.xlu0 %560, %v74_v12  }
  0x7e   :  { %v51_v15 = vpop.trf.xlu0 }
  0x80   :  { %v78_v24 = vpop.permute.xlu1 %77 }
  0x82   :  { %v52_v16 = vpop.trf.xlu0 }
  0x83   :  { %v67_v20 = vpack.c.bf16 %v52_v16, %v51_v15 }
  0x84   :  { %v83_v32 = vpop.permute.xlu1 %82 }
  0x86   :  { %v53_v17 = vpop.trf.xlu0 }
  0x88   :  { %v180_v50 = vpop.permute.xlu1 %179 }
  0x8a   :  { %v54_v18 = vpop.trf.xlu0 }
  0x8b   :  { %v68_v19 = vpack.c.bf16 %v54_v18, %v53_v17 }
  0x8c   :  { %v185_v54 = vpop.permute.xlu1 %184 }
  0x8d   :  { %525 = vmatprep.subr.bf16.mxu0 %v68_v19 }
  0x8e   :  { %526 = vmatpush3.bf16.msra.mxu0 %v68_v19 }
  0x8f   :  { %527 = vmatprep.subr.bf16.mxu0 %v67_v20 }
  0x90   :  { %v263_v63 = vpop.permute.xlu1 %262 }
  0x92   :  { %528 = vmatpush3.bf16.msra.mxu0 %v67_v20 }
  0x94   :  { %v253_v0 = vpop.permute.xlu1 %252 }
  0x95   :  { %530 = vmatmul.mubr.msk.bf16.vlgmr.msra.gmra.mxu0 %vm98_vm0, %v563_v21 }
  0x96   :  { %543 = vmatprep.mubr.msk.bf16.mxu0 %vm273_vm4, %v565_v49 }
  0x98   :  { %v258_v8 = vpop.permute.xlu1 %257 }
  0xb2   :  { %v88_v23 = vpop.permute.xlu0 %87 }
 0x155   :  { %v531_v25 = vpop.f32.mrf.mxu0 }
 0x156   :  { %v148_v26 = vadd.f32 %v531_v25, %v88_v23  ;;  %v359_v25 = vpop.permute.xlu1 %358 }
 0x157   :  { %v139_v27 = vpop.f32.mrf.mxu0 }
 0x158   :  { %v497_v28 = vmul.f32 -1.442695, %v148_v26  ;;  %v140_v29 = vadd.f32 %v139_v27, %v78_v24  ;;  %v568_v24 = vld [vmem:[%s754_s7 + $0x8] sm:$0xff]   ;;  %s622_s7 = smov [#allocation2]  }
 0x159   :  { %v532_v30 = vpop.f32.mrf.mxu0  ;;  %s483_s19 = sshll.u32 %s622_s7, 4  ;;  %s484_s19 = int_to_ptr.vmem [resolvable:$true] %s483_s19 }
 0x15a   :  { %569 = vpow2.f32 %v497_v28  ;;  %v495_v31 = vmul.f32 -1.442695, %v140_v29  ;;  %v364_v27 = vpop.permute.xlu1 %363  ;;  %s597_s20 = scalar_lea.vmem %s484_s19, 128  ;;  %p602_p1 = scmp.lt.s32.totalorder %s484_s19, %s484_s19 }
 0x15b   :  { %v142_v33 = vpop.f32.mrf.mxu0  ;;  %p598_p0 = scmp.ne.s32.totalorder %s484_s19, %s597_s20  ;;  %p603_p2 = scmp.lt.s32.totalorder %s597_s20, %s597_s20 }
 0x15c   :  { %571 = vpow2.f32 %v495_v31  ;;  %v143_v34 = vadd.f32 %v142_v33, %v83_v32 }
 0x15d   :  { %p604_p3 = por %p603_p2, %p602_p1 }
 0x15e   :  { %v496_v35 = vmul.f32 -1.442695, %v143_v34  ;;  %v369_v33 = vpop.permute.xlu1 %368 }
 0x15f   :  { %p605_p4 = pnand %p604_p3, %p598_p0 }
 0x160   :  { %573 = vpow2.f32 %v496_v35 }
 0x162   :  { %v374_v35 = vpop.permute.xlu1 %373 }
 0x167   :  { %v570_v36 = vpop.eup %569 }
 0x168   :  { %v164_v37 = vadd.f32 1.0, %v570_v36 }
 0x169   :  { %v572_v38 = vpop.eup %571 }
 0x16a   :  { %575 = vrcp.f32 %v164_v37  ;;  %v162_v39 = vadd.f32 1.0, %v572_v38 }
 0x16c   :  { %577 = vrcp.f32 %v162_v39 }
 0x16d   :  { %v574_v40 = vpop.eup %573 }
 0x16e   :  { %v163_v41 = vadd.f32 1.0, %v574_v40 }
 0x170   :  { %579 = vrcp.f32 %v163_v41 }
 0x177   :  { %v576_v42 = vpop.eup %575 }
 0x178   :  { %v174_v43 = vpack.c.bf16 %v576_v42, %v576_v42 }
 0x179   :  { %v578_v45 = vpop.eup %577 }
 0x17a   :  { %v198_v44 = vsel %vm196_vm2, %v174_v43, 0 }
 0x17b   :  { %534 = vmatpush3.bf16.msra.mxu1 %v198_v44 }
 0x17c   :  { %535 = vmatprep.subr.bf16.mxu1 %v620_v22 }
 0x17d   :  { %v580_v46 = vpop.eup %579 }
 0x17e   :  { %v173_v47 = vpack.c.bf16 %v580_v46, %v578_v45 }
 0x180   :  { %536 = vmatpush3.bf16.msra.mxu1 %v173_v47 }
 0x183   :  { %538 = vmatmul.mubr.msk.bf16.vlgmr.msra.gmra.mxu1 %vm192_vm3, %v564_v48 }
 0x184   :  { %551 = vmatprep.mubr.msk.bf16.mxu1 %vm192_vm3, %v567_v62 }
 0x243   :  { %v234_v51 = vpop.f32.mrf.mxu1 }
 0x244   :  { %v235_v52 = vadd.f32 %v234_v51, %v180_v50 }
 0x245   :  { %v539_v53 = vpop.f32.mrf.mxu1 }
 0x246   :  { %581 = vtanh.f32 %v235_v52 }
 0x247   :  { %v237_v55 = vpop.f32.mrf.mxu1 }
 0x248   :  { %v238_v56 = vadd.f32 %v237_v55, %v185_v54 }
 0x249   :  { %v540_v57 = vpop.f32.mrf.mxu1 }
 0x24a   :  { %583 = vtanh.f32 %v238_v56 }
 0x253   :  { %v582_v58 = vpop.eup %581 }
 0x257   :  { %v584_v59 = vpop.eup %583 }
 0x258   :  { %v246_v60 = vpack.c.bf16 %v584_v59, %v582_v58 }
 0x25a   :  { %541 = vmatprep.subr.bf16.mxu0 %v246_v60 }
 0x25b   :  { %542 = vmatpush3.bf16.msra.mxu0 %v246_v60 }
 0x25e   :  { %544 = vmatmul.mubr.msk.bf16.vlgmr.msra.gmra.mxu0 %vm273_vm4, %v566_v61 }
 0x31e   :  { %v545_v1 = vpop.f32.mrf.mxu0 }
 0x31f   :  { %v323_v2 = vadd.f32 %v545_v1, %v263_v63 }
 0x320   :  { %v314_v3 = vpop.f32.mrf.mxu0 }
 0x321   :  { %v506_v4 = vmul.f32 -1.442695, %v323_v2  ;;  %v315_v5 = vadd.f32 %v314_v3, %v253_v0 }
 0x322   :  { %v546_v6 = vpop.f32.mrf.mxu0 }
 0x323   :  { %585 = vpow2.f32 %v506_v4  ;;  %v504_v7 = vmul.f32 -1.442695, %v315_v5 }
 0x324   :  { %v317_v9 = vpop.f32.mrf.mxu0 }
 0x325   :  { %587 = vpow2.f32 %v504_v7  ;;  %v318_v10 = vadd.f32 %v317_v9, %v258_v8 }
 0x327   :  { %v505_v11 = vmul.f32 -1.442695, %v318_v10 }
 0x329   :  { %589 = vpow2.f32 %v505_v11 }
 0x330   :  { %v586_v12 = vpop.eup %585 }
 0x331   :  { %v339_v13 = vadd.f32 1.0, %v586_v12 }
 0x332   :  { %v588_v14 = vpop.eup %587 }
 0x333   :  { %591 = vrcp.f32 %v339_v13  ;;  %v337_v15 = vadd.f32 1.0, %v588_v14 }
 0x335   :  { %593 = vrcp.f32 %v337_v15 }
 0x336   :  { %v590_v16 = vpop.eup %589 }
 0x337   :  { %v338_v17 = vadd.f32 1.0, %v590_v16 }
 0x339   :  { %595 = vrcp.f32 %v338_v17 }
 0x340   :  { %v592_v18 = vpop.eup %591 }
 0x341   :  { %v351_v19 = vpack.c.bf16 %v592_v18, %v592_v18 }
 0x342   :  { %v594_v21 = vpop.eup %593 }
 0x343   :  { %555 = vmatprep.subr.msk.bf16.mxu1 %vm196_vm2, %v351_v19  ;;  %v393_v20 = vsel %vm196_vm2, %v351_v19, 0 }
 0x344   :  { %548 = vmatpush3.bf16.msra.mxu1 %v393_v20 }
 0x346   :  { %v596_v22 = vpop.eup %595 }
 0x347   :  { %v350_v23 = vpack.c.bf16 %v596_v22, %v594_v21 }
 0x349   :  { %549 = vmatprep.subr.bf16.mxu1 %v350_v23 }
 0x34a   :  { %550 = vmatpush3.bf16.msra.mxu1 %v350_v23 }
 0x34d   :  { %552 = vmatmul.mubr.msk.bf16.vlgmr.msra.gmra.mxu1 %vm192_vm3, %v568_v24 }
 0x40d   :  { %v553_v26 = vpop.f32.mrf.mxu1 }
 0x40e   :  { %v438_v34 = vadd.f32 %v553_v26, %v369_v33 }
 0x40f   :  { %v429_v28 = vpop.f32.mrf.mxu1 }
 0x410   :  { %v430_v29 = vadd.f32 %v429_v28, %v359_v25 }
 0x411   :  { %v554_v30 = vpop.f32.mrf.mxu1 }
 0x412   :  { %444 = vxpose.xlu1.b32.start [1/4] (short) (narrow) %v430_v29, 8  ;;  %v441_v36 = vadd.f32 %v554_v30, %v374_v35 }
 0x413   :  { %v432_v31 = vpop.f32.mrf.mxu1 }
 0x414   :  { %v433_v32 = vadd.f32 %v432_v31, %v364_v27 }
 0x416   :  { %445 = vxpose.xlu1.b32.cont [2/4] (short) (narrow) %v433_v32, 8 }
 0x41a   :  { %446 = vxpose.xlu1.b32.cont [3/4] (short) (narrow) %v438_v34, 8 }
 0x41e   :  { %447 = vxpose.xlu1.b32.end [4/4] (short) (narrow) %v441_v36, 8 }
 0x48e   :  { %v460_v37 = vpop.trf.xlu1 }
 0x48f   :  { %476 = vst.msk [vmem:[#allocation2] sm:$0xff] %vm98_vm0, %v460_v37 }
 0x490   :  { %608 = shalt.err (!%p605_p4)
}
 0x491   :  { %486 = dma.vmem_to_hbm [thread:$0]  %s484_s19, 128, %s756_s9, [#allocation3]  }
 0x492   :  { %617 = dma.done.wait [#allocation3], 128  }
 0x493   :  { %618 = vsyncadd [#allocation3], 4294967168 }
 0x494   :  { %490 = vsyncpa [#allocation3], 1 }

</bundles_post_ra>
